<compile_context>
chip_gen: v6e
topology: v6e:2x2x1
jax: 0.10.0
libtpu: 0.0.40
codegen_flags: <defaults>
</compile_context>

<pallas_src>
import jax
import jax.numpy as jnp
from jax.experimental import pallas as pl
from jax.experimental.pallas import tpu as pltpu


def _upsample1d_kernel(x_ref, h_ref, w_ref, b_ref, out_ref):
    """One (batch, L-tile) grid step, NCW layout (L on lanes).

    x_ref   : (1, C, TL)     input tile
    h_ref   : (1, 1, C, 2)   halo columns: [:,0]=x[:,start-1], [:,1]=x[:,end]
    w_ref   : (4, C, C)      transposed taps, w_ref[k] = weight[:, :, k].T (resident)
    b_ref   : (C, 1)         bias column (resident)
    out_ref : (1, 2, C, TL)  parity-major output: [:,0]=even (2m), [:,1]=odd (2m+1)
    """
    x = x_ref[0]                              # (C, TL) native dtype -> MXU
    lh = h_ref[0, 0, :, 0:1]                  # (C, 1)
    rh = h_ref[0, 0, :, 1:2]                  # (C, 1)
    tl = x.shape[1]

    # +/-1 column shifts fused with the halo insertion: one lane-shifted slice
    # + a 1-column concat each.  No negative roll, no full-tile iota/select,
    # and no extra intermediates beyond the shifted operand itself.
    x_prev = jnp.concatenate([lh, x[:, : tl - 1]], axis=1)    # x[:, m-1]
    x_next = jnp.concatenate([x[:, 1:], rh], axis=1)          # x[:, m+1]

    b = b_ref[...].astype(jnp.float32)                        # (C, 1)

    # Four accumulating (C,C)@(C,TL) matmuls; f32 accumulation on the MXU.
    ye = jnp.dot(w_ref[1], x, preferred_element_type=jnp.float32)
    ye = ye + jnp.dot(w_ref[3], x_prev, preferred_element_type=jnp.float32)
    yo = jnp.dot(w_ref[2], x, preferred_element_type=jnp.float32)
    yo = yo + jnp.dot(w_ref[0], x_next, preferred_element_type=jnp.float32)

    # Direct dense stores into the two parity slabs (no lane concat / pack).
    out_ref[0, 0] = (ye + b).astype(out_ref.dtype)
    out_ref[0, 1] = (yo + b).astype(out_ref.dtype)


def _round_up(a, b):
    return ((a + b - 1) // b) * b


def _vmem_limit_bytes():
    """Scoped-VMEM limit per generation: ~96 MiB on 128 MiB parts (v5e/v6e),
    ~48 MiB on 64 MiB parts (v7x)."""
    try:
        cap = int(pltpu.get_tpu_info().vmem_capacity_bytes)
    except Exception:
        cap = 64 * 1024 * 1024
    return max(16 * 1024 * 1024, (cap * 3) // 4)


def _vmem_working_set(tl, C, itemsize):
    """Per-grid-step VMEM bytes including kernel intermediates."""
    c8 = _round_up(max(C, 1), 8)          # sublane padding
    c128 = _round_up(max(C, 1), 128)      # lane padding of the weight blocks
    tl_pad = _round_up(max(tl, 1), 128)   # lane padding of the L tile
    x_blk = 2 * c8 * tl_pad * itemsize            # input tile, double-buffered
    out_blk = 2 * 2 * c8 * tl_pad * itemsize      # 2 parity slabs, double-buffered
    halo_blk = 2 * c8 * 128 * itemsize            # (C, 2) lane-padded, double-buffered
    weights = 2 * 4 * c8 * c128 * itemsize        # resident taps (counted 2x for safety)
    bias = c8 * 128 * itemsize
    inter = (2 * itemsize + 2 * 4) * c8 * tl_pad  # x_prev/x_next + f32 ye/yo
    return x_blk + out_blk + halo_blk + weights + bias + inter


def _choose_tiling(B, C, L, itemsize, vmem_limit):
    """Return (TL, L_pad, nt): lane-tile size, padded L, number of L tiles."""
    budget = int(0.85 * vmem_limit)
    want_split = (B < 2 and L >= 256)     # keep both v7x TensorCores busy
    if not want_split and _vmem_working_set(L, C, itemsize) <= budget:
        return L, L, 1                    # single tile, no padding needed
    lmax = _round_up(L, 128)
    tl = 128
    for cand in (1024, 512, 256, 128):    # target 512-1024 lanes per tile
        if cand <= lmax and _vmem_working_set(cand, C, itemsize) <= budget:
            tl = cand
            break
    if want_split and tl >= lmax:         # force >= 2 L-tiles for megacore
        tl = max(128, _round_up(lmax // 2, 128))
    l_pad = _round_up(L, tl)
    return tl, l_pad, l_pad // tl


@jax.jit
def upsample1d(x, weight, bias):
    """ConvTranspose1d(dim, dim, 4, stride=2, padding=1).

    x: (B, C, L).  weight: (C_in, C_out, 4).  bias: (C_out,).  Returns (B, C, 2L).
    """
    B, C, L = x.shape
    itemsize = jnp.dtype(x.dtype).itemsize
    vmem_limit = _vmem_limit_bytes()
    TL, L_pad, nt = _choose_tiling(B, C, L, itemsize, vmem_limit)

    # Zero-padding L is semantics-preserving here (padded columns only feed
    # output positions >= 2L, which are sliced off; x[L] is genuinely zero).
    xp = x if L_pad == L else jnp.pad(x, ((0, 0), (0, 0), (0, L_pad - L)))

    # Tiny per-(batch, tile) halo columns, combined L/R -> one small DMA/step.
    zcol = jnp.zeros((B, C, 1), dtype=x.dtype)
    if nt > 1:
        lcols = jnp.concatenate([zcol, xp[:, :, TL - 1:L_pad - 1:TL]], axis=2)  # (B, C, nt)
        rcols = jnp.concatenate([xp[:, :, TL:L_pad:TL], zcol], axis=2)          # (B, C, nt)
    else:
        lcols, rcols = zcol, zcol
    halos = jnp.transpose(jnp.stack([lcols, rcols], axis=-1), (0, 2, 1, 3))     # (B, nt, C, 2)

    # Pre-transposed taps (C_out, C_in): the kernel contracts over C_in with L
    # on lanes.  Params are cast to the activation dtype (pure bf16 MXU feed
    # when x is bf16); accumulation stays f32 inside the kernel.
    # TODO(synk): for very large C on v7x, tile the output-C dim on a 3rd grid axis.
    wt = jnp.transpose(weight, (2, 1, 0)).astype(x.dtype)      # (4, C, C)
    bcol = bias.reshape(C, 1).astype(x.dtype)

    grid = (B, nt)
    flops = 8 * B * L_pad * C * C
    bytes_accessed = itemsize * (3 * B * C * L_pad + 4 * C * C + C + 2 * B * nt * C)

    y = pl.pallas_call(
        _upsample1d_kernel,
        out_shape=jax.ShapeDtypeStruct((B, 2, C, L_pad), x.dtype),
        grid=grid,
        in_specs=[
            pl.BlockSpec((1, C, TL), lambda b, l: (b, 0, l)),        # x tile (NCW)
            pl.BlockSpec((1, 1, C, 2), lambda b, l: (b, l, 0, 0)),   # halo columns
            pl.BlockSpec((4, C, C), lambda b, l: (0, 0, 0)),         # taps (resident)
            pl.BlockSpec((C, 1), lambda b, l: (0, 0)),               # bias (resident)
        ],
        out_specs=pl.BlockSpec((1, 2, C, TL), lambda b, l: (b, 0, 0, l)),
        compiler_params=pltpu.CompilerParams(
            dimension_semantics=("parallel", "parallel"),
            vmem_limit_bytes=vmem_limit,
        ),
        cost_estimate=pl.CostEstimate(
            flops=flops, transcendentals=0, bytes_accessed=bytes_accessed),
    )(xp, halos, wt, bcol)

    # Interleave even/odd output columns and drop L padding in one XLA pass.
    # TODO(synk): move this interleave into the kernel (strided lane store /
    # lane swizzle) to reach pure-roofline traffic once verified on HW.
    out = jnp.transpose(y[:, :, :, :L], (0, 2, 3, 1)).reshape(B, C, 2 * L)
    return out


def _reference_conv_transpose1d(x, weight, bias):
    """Direct ConvTranspose1d(dim, dim, 4, 2, 1) reference in plain JAX."""
    B, C, L = x.shape
    K, stride, pad = 4, 2, 1
    Lout = (L - 1) * stride - 2 * pad + K
    out = jnp.broadcast_to(bias[None, :, None], (B, C, Lout)).astype(jnp.float32)
    for k in range(K):
        for l in range(L):
            t = l * stride - pad + k
            if 0 <= t < Lout:
                contrib = jnp.einsum('bi,io->bo', x[:, :, l], weight[:, :, k])
                out = out.at[:, :, t].add(contrib)
    return out


if __name__ == "__main__":
    B, dim, L = 2, 4, 16
    key = jax.random.PRNGKey(0)
    kx, kw, kb = jax.random.split(key, 3)

    x = jax.random.normal(kx, (B, dim, L), dtype=jnp.float32)
    # ConvTranspose1d weight layout: (C_in, C_out, K)
    weight = 0.1 * jax.random.normal(kw, (dim, dim, 4), dtype=jnp.float32)
    bias = 0.1 * jax.random.normal(kb, (dim,), dtype=jnp.float32)

    out = upsample1d(x, weight, bias)
    out = jax.block_until_ready(out)

    ref = _reference_conv_transpose1d(x, weight, bias)
    assert out.shape == (B, dim, 2 * L), out.shape
    assert jnp.allclose(out, ref, atol=1e-5, rtol=1e-5), "mismatch vs reference"

    print("KERNEL_OK")
</pallas_src>

<mosaic_0001>
module attributes {stable_mosaic.version = 11 : i64} {
  func.func @_upsample1d_kernel(%arg0: i32, %arg1: i32, %arg2: memref<1x4x16xf32, #tpu.memory_space<vmem>>, %arg3: memref<1x1x4x2xf32, #tpu.memory_space<vmem>>, %arg4: memref<4x4x4xf32, #tpu.memory_space<vmem>>, %arg5: memref<4x1xf32, #tpu.memory_space<vmem>>, %arg6: memref<1x2x4x16xf32, #tpu.memory_space<vmem>>) attributes {dimension_semantics = [#tpu.dimension_semantics<parallel>, #tpu.dimension_semantics<parallel>], iteration_bounds = array<i64: 2, 1>, scalar_prefetch = 0 : i64, scratch_operands = 0 : i64, tpu.core_type = #tpu.core_type<tc>, window_params = [{transform_indices = @transform_0, window_bounds = array<i64: 1, 4, 16>}, {transform_indices = @transform_1, window_bounds = array<i64: 1, 1, 4, 2>}, {pipeline_mode = #tpu.pipeline_mode<synchronous>, transform_indices = @transform_2, window_bounds = array<i64: 4, 4, 4>}, {pipeline_mode = #tpu.pipeline_mode<synchronous>, transform_indices = @transform_3, window_bounds = array<i64: 4, 1>}, {transform_indices = @transform_4, window_bounds = array<i64: 1, 2, 4, 16>}]} {
    %c0 = arith.constant 0 : index
    %c0_0 = arith.constant 0 : index
    %c0_1 = arith.constant 0 : index
    %0 = vector.load %arg2[%c0, %c0_0, %c0_1] : memref<1x4x16xf32, #tpu.memory_space<vmem>>, vector<1x4x16xf32>
    %1 = vector.shape_cast %0 : vector<1x4x16xf32> to vector<4x16xf32>
    %c0_2 = arith.constant 0 : index
    %c0_3 = arith.constant 0 : index
    %c0_4 = arith.constant 0 : index
    %c0_5 = arith.constant 0 : index
    %2 = vector.load %arg3[%c0_2, %c0_3, %c0_4, %c0_5] : memref<1x1x4x2xf32, #tpu.memory_space<vmem>>, vector<1x1x4x1xf32>
    %3 = vector.shape_cast %2 : vector<1x1x4x1xf32> to vector<4x1xf32>
    %c0_6 = arith.constant 0 : index
    %c0_7 = arith.constant 0 : index
    %c0_8 = arith.constant 0 : index
    %c1 = arith.constant 1 : index
    %4 = vector.load %arg3[%c0_6, %c0_7, %c0_8, %c1] : memref<1x1x4x2xf32, #tpu.memory_space<vmem>>, vector<1x1x4x1xf32>
    %5 = vector.shape_cast %4 : vector<1x1x4x1xf32> to vector<4x1xf32>
    %6 = vector.extract_strided_slice %1 {offsets = [0, 0], sizes = [4, 15], strides = [1, 1]} : vector<4x16xf32> to vector<4x15xf32>
    %7 = tpu.concatenate %3, %6 in 1 : vector<4x1xf32>, vector<4x15xf32> -> vector<4x16xf32>
    %8 = vector.extract_strided_slice %1 {offsets = [0, 1], sizes = [4, 15], strides = [1, 1]} : vector<4x16xf32> to vector<4x15xf32>
    %9 = tpu.concatenate %8, %5 in 1 : vector<4x15xf32>, vector<4x1xf32> -> vector<4x16xf32>
    %c0_9 = arith.constant 0 : index
    %c0_10 = arith.constant 0 : index
    %10 = vector.load %arg5[%c0_9, %c0_10] : memref<4x1xf32, #tpu.memory_space<vmem>>, vector<4x1xf32>
    %c1_11 = arith.constant 1 : index
    %c0_12 = arith.constant 0 : index
    %c0_13 = arith.constant 0 : index
    %11 = vector.load %arg4[%c1_11, %c0_12, %c0_13] : memref<4x4x4xf32, #tpu.memory_space<vmem>>, vector<1x4x4xf32>
    %12 = vector.shape_cast %11 : vector<1x4x4xf32> to vector<4x4xf32>
    %cst = arith.constant dense<0.000000e+00> : vector<4x16xf32>
    %13 = tpu.matmul %12, %1, %cst {dimension_numbers = #tpu.dot_dimension_numbers<[1], [0], [0], [1], [0, 0, 1, 1], [], []>} : vector<4x4xf32>, vector<4x16xf32>, vector<4x16xf32> -> vector<4x16xf32>
    %c3 = arith.constant 3 : index
    %c0_14 = arith.constant 0 : index
    %c0_15 = arith.constant 0 : index
    %14 = vector.load %arg4[%c3, %c0_14, %c0_15] : memref<4x4x4xf32, #tpu.memory_space<vmem>>, vector<1x4x4xf32>
    %15 = vector.shape_cast %14 : vector<1x4x4xf32> to vector<4x4xf32>
    %cst_16 = arith.constant dense<0.000000e+00> : vector<4x16xf32>
    %16 = tpu.matmul %15, %7, %cst_16 {dimension_numbers = #tpu.dot_dimension_numbers<[1], [0], [0], [1], [0, 0, 1, 1], [], []>} : vector<4x4xf32>, vector<4x16xf32>, vector<4x16xf32> -> vector<4x16xf32>
    %17 = arith.addf %13, %16 : vector<4x16xf32>
    %c2 = arith.constant 2 : index
    %c0_17 = arith.constant 0 : index
    %c0_18 = arith.constant 0 : index
    %18 = vector.load %arg4[%c2, %c0_17, %c0_18] : memref<4x4x4xf32, #tpu.memory_space<vmem>>, vector<1x4x4xf32>
    %19 = vector.shape_cast %18 : vector<1x4x4xf32> to vector<4x4xf32>
    %cst_19 = arith.constant dense<0.000000e+00> : vector<4x16xf32>
    %20 = tpu.matmul %19, %1, %cst_19 {dimension_numbers = #tpu.dot_dimension_numbers<[1], [0], [0], [1], [0, 0, 1, 1], [], []>} : vector<4x4xf32>, vector<4x16xf32>, vector<4x16xf32> -> vector<4x16xf32>
    %c0_20 = arith.constant 0 : index
    %c0_21 = arith.constant 0 : index
    %c0_22 = arith.constant 0 : index
    %21 = vector.load %arg4[%c0_20, %c0_21, %c0_22] : memref<4x4x4xf32, #tpu.memory_space<vmem>>, vector<1x4x4xf32>
    %22 = vector.shape_cast %21 : vector<1x4x4xf32> to vector<4x4xf32>
    %cst_23 = arith.constant dense<0.000000e+00> : vector<4x16xf32>
    %23 = tpu.matmul %22, %9, %cst_23 {dimension_numbers = #tpu.dot_dimension_numbers<[1], [0], [0], [1], [0, 0, 1, 1], [], []>} : vector<4x4xf32>, vector<4x16xf32>, vector<4x16xf32> -> vector<4x16xf32>
    %24 = arith.addf %20, %23 : vector<4x16xf32>
    %25 = vector.broadcast %10 : vector<4x1xf32> to vector<4x16xf32>
    %26 = arith.addf %17, %25 : vector<4x16xf32>
    %c0_24 = arith.constant 0 : index
    %c0_25 = arith.constant 0 : index
    %c0_26 = arith.constant 0 : index
    %c0_27 = arith.constant 0 : index
    %27 = vector.load %arg6[%c0_24, %c0_25, %c0_26, %c0_27] : memref<1x2x4x16xf32, #tpu.memory_space<vmem>>, vector<1x1x4x16xf32>
    %28 = vector.shape_cast %27 : vector<1x1x4x16xf32> to vector<4x16xf32>
    %29 = vector.shape_cast %26 : vector<4x16xf32> to vector<1x1x4x16xf32>
    tpu.vector_store %arg6[%c0_24, %c0_25, %c0_26, %c0_27], %29 {strides = array<i32>} : memref<1x2x4x16xf32, #tpu.memory_space<vmem>>, vector<1x1x4x16xf32>,
    %30 = vector.broadcast %10 : vector<4x1xf32> to vector<4x16xf32>
    %31 = arith.addf %24, %30 : vector<4x16xf32>
    %c0_28 = arith.constant 0 : index
    %c1_29 = arith.constant 1 : index
    %c0_30 = arith.constant 0 : index
    %c0_31 = arith.constant 0 : index
    %32 = vector.load %arg6[%c0_28, %c1_29, %c0_30, %c0_31] : memref<1x2x4x16xf32, #tpu.memory_space<vmem>>, vector<1x1x4x16xf32>
    %33 = vector.shape_cast %32 : vector<1x1x4x16xf32> to vector<4x16xf32>
    %34 = vector.shape_cast %31 : vector<4x16xf32> to vector<1x1x4x16xf32>
    tpu.vector_store %arg6[%c0_28, %c1_29, %c0_30, %c0_31], %34 {strides = array<i32>} : memref<1x2x4x16xf32, #tpu.memory_space<vmem>>, vector<1x1x4x16xf32>,
    return
  }
  func.func @transform_0(%arg0: i32, %arg1: i32) -> (i32, i32, i32) {
    %c0_i32 = arith.constant 0 : i32
    %c0_i32_0 = arith.constant 0 : i32
    return %arg0, %c0_i32, %arg1 : i32, i32, i32
  }
  func.func @transform_1(%arg0: i32, %arg1: i32) -> (i32, i32, i32, i32) {
    %c0_i32 = arith.constant 0 : i32
    %c0_i32_0 = arith.constant 0 : i32
    %c0_i32_1 = arith.constant 0 : i32
    return %arg0, %arg1, %c0_i32, %c0_i32_0 : i32, i32, i32, i32
  }
  func.func @transform_2(%arg0: i32, %arg1: i32) -> (i32, i32, i32) {
    %c0_i32 = arith.constant 0 : i32
    %c0_i32_0 = arith.constant 0 : i32
    %c0_i32_1 = arith.constant 0 : i32
    %c0_i32_2 = arith.constant 0 : i32
    return %c0_i32, %c0_i32_0, %c0_i32_1 : i32, i32, i32
  }
  func.func @transform_3(%arg0: i32, %arg1: i32) -> (i32, i32) {
    %c0_i32 = arith.constant 0 : i32
    %c0_i32_0 = arith.constant 0 : i32
    %c0_i32_1 = arith.constant 0 : i32
    return %c0_i32, %c0_i32_0 : i32, i32
  }
  func.func @transform_4(%arg0: i32, %arg1: i32) -> (i32, i32, i32, i32) {
    %c0_i32 = arith.constant 0 : i32
    %c0_i32_0 = arith.constant 0 : i32
    %c0_i32_1 = arith.constant 0 : i32
    return %arg0, %c0_i32, %c0_i32_0, %arg1 : i32, i32, i32, i32
  }
}

</mosaic_0001>

<bundles_post_ra>
// kernel: upsample1d.1
= control target key start
LH: loop header
LB: loop body
LE: loop exit
PB: predicated region body
PF: predicated region fallthrough
CT: control target
= control target key end

     0   :  { %s826_s15 = smov 0   ;;  %s828_s16 = smov 0   ;;  %s893_s0 = inlined_call_operand.vmem [shape: f32[2,4,16], index: 0, kind: input, shape index: {}]   ;;  %s894_s1 = inlined_call_operand.vmem [shape: f32[2,1,4,2], index: 1, kind: input, shape index: {}]   ;;  %s895_s2 = inlined_call_operand.vmem [shape: f32[4,4,4], index: 2, kind: input, shape index: {}]   ;;  %s896_s3 = inlined_call_operand.vmem [shape: f32[4,1], index: 3, kind: input, shape index: {}]   ;;  %s897_s4 = inlined_call_operand.vmem [shape: f32[2,2,4,16], index: 4, kind: output, shape index: {}]  }
   0x1   :  { %s830_s17 = smov 0  }
   0x2 LB: > { %s26_s18 = sadd.s32 1, %s789_s16  ;;  %p691_p0 = scmp.ge.s32.totalorder %s793_s17, 1  ;;  %s793_s17 = sphi %s830_s17, %s14_s17   ;;  %s789_s16 = sphi %s828_s16, %s899_s16   ;;  %s785_s15 = sphi %s826_s15, %s898_s15  }
   0x3   : > { %p28_p1 = scmp.ge.s32.totalorder %s26_s18, 2  ;;  %p194_p2 = scmp.lt.s32.totalorder %s793_s17, 3 }
   0x5   : > { %s901_s18 = smov (%p28_p1, %s26_s18), 0  ;;  %p195_p3 = pnand %p691_p0, %p194_p2 }
   0x6   : > { %p232_p4 = scmp.lt.s32.totalorder (!%p195_p3), %s785_s15, 1  ;;  %s798_s28 = smov (!%p195_p3), 1  }
   0x7   : > { %198 = sbr.rel (%p195_p3) target bundleno = 335 (0x14f), region = 36  ;;  %s799_s29 = smov (!%p195_p3), 14  }
   0x8   : > { %s800_s8 = smov (!%p195_p3), 127  }
   0xc   : > { %v795_v0 = vmov 0.0   ;;  %s903_s15 = smov (!%p232_p4, %s785_s15), 1  ;;  %vm796_vm0 = vmmov 0   ;;  %v797_v1 = vmov 0   ;;  %vm280_vm1 = vcmask 1043456  }
   0xd   : > { %719 = vmatprep.subr.mxu0 %v795_v0  ;;  %724 = vmatprep.subr.mxu1 %v795_v0  ;;  %s692_s19 = sshll.u32 %s903_s15, 2  ;;  %vm276_vm2 = vcmask 31744   ;;  %v696_v4 = vld [vmem:[%s895_s2 + $0x4] sm:$0xf]  ;;  %v271_v5 = vld [vmem:[%s896_s3] sm:$0xf] }
   0xe   : > { %721 = vmatprep.mubr.msk.f32.mxu0 %vm796_vm0, %v795_v0  ;;  %726 = vmatprep.mubr.msk.f32.mxu1 %vm796_vm0, %v795_v0  ;;  %s238_s22 = scalar_lea.vmem %s893_s0, %s692_s19  ;;  %s245_s25 = scalar_lea.vmem %s894_s1, %s692_s19  ;;  %v702_v6 = vld [vmem:[%s895_s2 + $0x8] sm:$0xf]  ;;  %vm260_vm3 = vcmask 7168   ;;  %v697_v8 = vld [vmem:[%s895_s2 + $0xc] sm:$0xf]  ;;  %vm269_vm4 = vcmask 121856  }
   0xf   : > { %769 = vset.pattern.permute.xlu1 %v797_v1  ;;  %770 = vset.pattern.permute.xlu0 %v797_v1  ;;  %v254_v2 = vld [vmem:[%s238_s22] sm:$0xf]  ;;  %s710_s13 = sshll.u32 %s903_s15, 3  ;;  %vm587_vm5 = vcmask 125952  }
  0x10   : > { %v255_v3 = vld [vmem:[%s245_s25] sm:$0xf]  ;;  %257 = vrot.lane.b32.xlu0 %v254_v2, %s798_s28  ;;  %725 = vmatpush3.msk.msra.mxu1 %vm280_vm1, %v254_v2  ;;  %s253_s20 = scalar_lea.vmem %s897_s4, %s710_s13 }
  0x11   : > { %266 = vrot.lane.b32.xlu1 %v255_v3, %s799_s29  ;;  %727 = vmatmul.mubr.msk.f32.vlgmr.msra.gmra.mxu1 %vm276_vm2, %v696_v4  ;;  %v431_v12 = vld [vmem:[%s895_s2] sm:$0xf] }
  0x12   : > { %734 = vmatprep.subr.mxu1 %v795_v0  ;;  %736 = vmatprep.mubr.msk.f32.mxu1 %vm796_vm0, %v795_v0 }
  0x13   : > { %735 = vmatpush3.msk.msra.mxu1 %vm280_vm1, %v254_v2 }
  0x14   : > { %262 = vrot.lane.b32.xlu0 %v254_v2, %s800_s8 }
  0x15   : > { %583 = vperm.xlu1 %769, %v271_v5   ;;  %737 = vmatmul.mubr.msk.f32.vlgmr.msra.gmra.mxu1 %vm276_vm2, %v702_v6 }
  0x82   : > { %v258_v7 = vpop.permute.xlu0 %257 }
  0x83   : > { %v261_v9 = vsel %vm260_vm3, %v255_v3, %v258_v7  ;;  %v267_v10 = vpop.permute.xlu1 %266 }
  0x84   : > { %720 = vmatpush3.msk.msra.mxu0 %vm280_vm1, %v261_v9 }
  0x85   : > { %722 = vmatmul.mubr.msk.f32.vlgmr.msra.gmra.mxu0 %vm276_vm2, %v697_v8  ;;  %729 = vmatprep.subr.mxu0 %v795_v0 }
  0x86   : > { %v263_v11 = vpop.permute.xlu0 %262  ;;  %731 = vmatprep.mubr.msk.f32.mxu0 %vm796_vm0, %v795_v0 }
  0x87   : > { %v270_v13 = vsel %vm269_vm4, %v263_v11, %v267_v10 }
  0x88   : > { %730 = vmatpush3.msk.msra.mxu0 %vm280_vm1, %v270_v13 }
  0x89   : > { %732 = vmatmul.mubr.msk.f32.vlgmr.msra.gmra.mxu0 %vm276_vm2, %v431_v12 }
  0x90   : > { %v584_v19 = vpop.permute.xlu1 %583 }
  0xd1   : > { %v425_v14 = vpop.f32.mrf.mxu1 }
  0xd3   : > { %v728_v15 = vpop.f32.mrf.mxu1 }
  0xd5   : > { %v577_v16 = vpop.f32.mrf.mxu1 }
  0xd7   : > { %v738_v17 = vpop.f32.mrf.mxu1 }
 0x145   : > { %v350_v18 = vpop.f32.mrf.mxu0 }
 0x146   : > { %v426_v20 = vadd.f32 %v425_v14, %v350_v18 }
 0x147   : > { %v723_v21 = vpop.f32.mrf.mxu0 }
 0x148   : > { %v586_v22 = vadd.f32 %v584_v19, %v426_v20 }
 0x149   : > { %v504_v23 = vpop.f32.mrf.mxu0 }
 0x14a   : > { %588 = vst.msk [vmem:[%s253_s20] sm:$0xf] %vm587_vm5, %v586_v22  ;;  %v578_v24 = vadd.f32 %v577_v16, %v504_v23 }
 0x14b   : > { %v733_v25 = vpop.f32.mrf.mxu0 }
 0x14c   : > { %v589_v26 = vadd.f32 %v584_v19, %v578_v24 }
 0x14e   : > { %707 = vst.msk [vmem:[%s253_s20 + $0x4] sm:$0xf] %vm587_vm5, %v589_v26 }
 0x14f PF: > { %s14_s17 = sadd.s32 1, %s793_s17   ;;  %s898_s15 = smov %s789_s16 }
 0x150   : > { %p11_p5 = scmp.ge.s32.totalorder %s14_s17, 4   ;;  %s899_s16 = smov %s901_s18 }
 0x152   :  { %13 = sbr.rel (!%p11_p5) target bundleno = 2 (0x2), region = 73 }

</bundles_post_ra>
